<compile_context>
chip_gen: v7x
topology: tpu7x:2x2x1
jax: 0.10.0
libtpu: 0.0.40
codegen_flags: <defaults>
</compile_context>

<pallas_src>
import functools
import math

import jax
import jax.numpy as jnp
from jax import lax
from jax.experimental import pallas as pl
from jax.experimental.pallas import tpu as pltpu

_VMEM_LIMIT_BYTES = 48 * 1024 * 1024   # < 64 MiB physical on v7x, << 128 MiB on v5e/v6e
_PASS1_BUDGET = 24 * 1024 * 1024
_PASS2_BUDGET = 26 * 1024 * 1024
_CAP_INNER = 1024                      # lanes of the capacity axis materialized at once
_TILE_CANDIDATES = (2048, 1024, 512, 256, 128, 64, 32, 16, 8)


def _round_up(x, m):
    return ((x + m - 1) // m) * m


def _pick_tile(num_tokens, per_token_bytes, budget, multiple_of=1):
    """Largest candidate token tile that divides T, fits the VMEM budget and is a
    multiple of `multiple_of`."""
    limit = max(8, budget // max(per_token_bytes, 1))
    for cand in _TILE_CANDIDATES:
        if cand <= limit and num_tokens % cand == 0 and cand % multiple_of == 0:
            return cand
    return num_tokens  # small / odd T: single block


def _cumsum_axis0(x):
    """Inclusive prefix sum along axis 0: log-depth shift-and-add (no O(n^2) buffers)."""
    n = x.shape[0]
    shift = 1
    while shift < n:
        pad = jnp.zeros((shift,) + x.shape[1:], x.dtype)
        x = x + jnp.concatenate([pad, x[: n - shift]], axis=0)
        shift *= 2
    return x


# --------------------------------------------------------------------------------------
# pass 1: routing (logits -> softmax -> top-1 / top-2 -> per-chunk expert histograms)
# --------------------------------------------------------------------------------------
def _routing_kernel(x_ref, w_ref, g_ref,
                    idx1_ref, idx2_ref, g1_ref, g2_ref,
                    cnt1_ref, cnt2_ref, gsum_ref,
                    *, num_experts, n_sub, sub_tokens):
    f32 = jnp.float32
    tT = x_ref.shape[0]
    E = num_experts

    # fused routing matmul: logits = x @ (w_reduce_t @ normalized_centroids)
    logits = jnp.dot(x_ref[...], w_ref[...], preferred_element_type=f32)      # (tT, E)

    # _make_finite: replace non-finite entries with the min of the (tile-local) finite ones.
    ok = jnp.abs(logits) < jnp.inf
    fmin = jnp.min(jnp.where(ok, logits, jnp.inf), keepdims=True)             # (1, 1)
    fmin = jnp.where(fmin < jnp.inf, fmin, f32(0.0))                          # all-nonfinite guard
    logits = jnp.where(ok, logits, fmin)

    # gates = softmax(logits, axis=1)
    lmax = jnp.max(logits, axis=1, keepdims=True)
    ex = jnp.exp(logits - lmax)
    gates = ex / jnp.sum(ex, axis=1, keepdims=True)                           # (tT, E)

    col = lax.broadcasted_iota(jnp.int32, (tT, E), 1)

    # top-1 expert (argmax, first-index tie-break)
    gmax = jnp.max(gates, axis=1, keepdims=True)
    idx1 = jnp.min(jnp.where(gates == gmax, col, E), axis=1, keepdims=True)   # (tT, 1) i32
    mask1 = col == idx1

    # top-2 expert on gumbel-noised logits with top-1 masked out
    noisy = logits + g_ref[...]
    except1 = jnp.where(mask1, -jnp.inf, noisy)
    lmax2 = jnp.max(except1, axis=1, keepdims=True)
    idx2 = jnp.min(jnp.where(except1 == lmax2, col, E), axis=1, keepdims=True)
    mask2 = col == idx2

    idx1_ref[...] = idx1
    idx2_ref[...] = idx2
    # selected (pre-dropping) gate probabilities
    g1_ref[...] = jnp.sum(jnp.where(mask1, gates, 0.0), axis=1, keepdims=True)
    g2_ref[...] = jnp.sum(jnp.where(mask2, gates, 0.0), axis=1, keepdims=True)

    # per-chunk (pass-2 tile sized) per-expert histograms, pre-dropping.
    m1f = mask1.astype(f32)
    m2f = mask2.astype(f32)
    if n_sub == 1:
        cnt1 = jnp.sum(m1f, axis=0, keepdims=True)                            # (1, E)
        cnt2 = jnp.sum(m2f, axis=0, keepdims=True)
    else:
        # tiny segment-sum matmul: seg[s, t] = 1 iff token t lies in sub-chunk s
        rows = lax.broadcasted_iota(jnp.int32, (n_sub, tT), 0)
        cols = lax.broadcasted_iota(jnp.int32, (n_sub, tT), 1)
        seg = ((cols >= rows * sub_tokens)
               & (cols < (rows + 1) * sub_tokens)).astype(f32)                # (n_sub, tT)
        cnt1 = jnp.dot(seg, m1f, preferred_element_type=f32)                  # (n_sub, E)
        cnt2 = jnp.dot(seg, m2f, preferred_element_type=f32)
    cnt1_ref[...] = cnt1[None].astype(jnp.int32)
    cnt2_ref[...] = cnt2[None].astype(jnp.int32)
    gsum_ref[...] = jnp.sum(gates, axis=0, keepdims=True)[None]


# --------------------------------------------------------------------------------------
# pass 2: slot locations, capacity dropping, gate renormalization, combine / dispatch
# --------------------------------------------------------------------------------------
def _combine_kernel(idx1_ref, idx2_ref, g1_ref, g2_ref, off1_ref, off2_ref,
                    comb_ref, disp_ref, *, capacity, num_experts, inner):
    f32 = jnp.float32
    tT = idx1_ref.shape[0]
    E = num_experts

    col = lax.broadcasted_iota(jnp.int32, (tT, E), 1)
    mask1 = col == idx1_ref[...]
    mask2 = col == idx2_ref[...]

    # locations = (global cumsum of mask) - 1 : tile-local scan + per-chunk expert offsets
    loc1 = _cumsum_axis0(mask1.astype(jnp.int32)) - 1 + off1_ref[0]           # (tT, E) i32
    loc2 = _cumsum_axis0(mask2.astype(jnp.int32)) - 1 + off2_ref[0]

    # capacity dropping (integer compares)
    keep1 = mask1 & (loc1 < capacity)
    keep2 = mask2 & (loc2 < capacity)
    keep1_f = keep1.astype(f32)
    keep2_f = keep2.astype(f32)

    kept1 = jnp.sum(keep1_f, axis=1, keepdims=True)                           # (tT, 1) in {0,1}
    kept2 = jnp.sum(keep2_f, axis=1, keepdims=True)

    # gate probabilities, normalized after dropping (module default)
    g1 = g1_ref[...] * kept1
    g2 = g2_ref[...] * kept2
    denom = jnp.maximum(g1 + g2, jnp.finfo(jnp.float32).eps)
    g1n = g1 / denom
    g2n = g2 / denom

    # per (token, expert): combine value and the capacity slot it lands in (-1 = unused)
    v = keep1_f * g1n + keep2_f * g2n                                         # (tT, E) f32
    c = jnp.where(keep1, loc1, jnp.where(keep2, loc2, -1))                    # (tT, E) i32
    v3 = v[:, :, None]
    c3 = c[:, :, None]

    # emit the (tT, E, capacity) slabs in lane chunks so temporaries stay small
    for base in range(0, capacity, inner):
        width = min(inner, capacity - base)
        it = base + lax.broadcasted_iota(jnp.int32, (tT, E, width), 2)
        sel = jnp.where(it == c3, v3, 0.0)                                    # (tT, E, width)
        comb_ref[:, :, base:base + width] = sel
        disp_ref[:, :, base:base + width] = (sel > 0.0).astype(jnp.int8)


# --------------------------------------------------------------------------------------
# wrapper
# --------------------------------------------------------------------------------------
def top2gate_forward(x, w_reduce_t, centroids_t, gumbel_noise, *,
                     eval_mode=True, moe_eval_capacity_token_fraction=1.0):
    """Returns (l_aux, combine_weights, dispatch_mask, metadata) like Top2Gate.forward.

    Covers the module defaults: use_xmoe=True, second_expert_policy='sampling' (pass
    zeros as gumbel_noise to disable the noise), normalize_gate_prob_before_dropping=False,
    input mask=None.
    """
    num_tokens, model_dim = x.shape
    num_experts = centroids_t.shape[1]

    if moe_eval_capacity_token_fraction > 0.0 and eval_mode:
        capacity = math.ceil(moe_eval_capacity_token_fraction * num_tokens)
    else:
        capacity = 2 * math.ceil(num_tokens / num_experts)

    e_pad = _round_up(num_experts, 8)
    cap_v = _round_up(capacity, 128)          # VMEM lane padding, for budgeting only
    inner = min(cap_v, _CAP_INNER)

    # pass-2 tile: double-buffered (f32 + i8) output blocks + chunk-sized temporaries
    per_tok2 = 2 * 5 * e_pad * cap_v + 16 * e_pad * inner + 64
    t2 = _pick_tile(num_tokens, per_tok2, _PASS2_BUDGET)
    # pass-1 tile: double-buffered x (+ gumbel) blocks; must be a multiple of t2 so the
    # per-chunk histograms line up with pass-2 tiles.
    per_tok1 = 2 * (4 * model_dim + 4 * num_experts) + 64
    t1 = _pick_tile(num_tokens, per_tok1, _PASS1_BUDGET, multiple_of=t2)

    n_sub = t1 // t2
    nt1 = num_tokens // t1
    nt2 = num_tokens // t2

    # Fuse the two routing matmuls: logits = x @ (w_reduce_t @ normalize(centroids_t)).
    # (The torch in-place centroid rescale mul_(1.5/norm) is irrelevant for the logits,
    #  since _cosine re-normalizes the centroids to unit norm.)
    c32 = centroids_t.astype(jnp.float32)
    c_norm = jnp.sqrt(jnp.sum(c32 * c32, axis=0, keepdims=True))
    w_eff = jnp.dot(w_reduce_t.astype(jnp.float32),
                    c32 / jnp.maximum(c_norm, 1e-4))                          # (D, E) f32

    x_in = x                                   # no wrapper-side cast (extra HBM pass)
    w_in = w_eff.astype(x.dtype)
    gumbel = gumbel_noise.astype(jnp.float32)

    cparams = pltpu.CompilerParams(
        dimension_semantics=("parallel",),
        vmem_limit_bytes=_VMEM_LIMIT_BYTES,
    )

    # ---- pass 1: routing ----
    idx1, idx2, g1, g2, cnt1_t, cnt2_t, gsum_t = pl.pallas_call(
        functools.partial(_routing_kernel, num_experts=num_experts,
                          n_sub=n_sub, sub_tokens=t2),
        grid=(nt1,),
        in_specs=[
            pl.BlockSpec((t1, model_dim), lambda i: (i, 0)),
            pl.BlockSpec((model_dim, num_experts), lambda i: (0, 0)),
            pl.BlockSpec((t1, num_experts), lambda i: (i, 0)),
        ],
        out_specs=(
            pl.BlockSpec((t1, 1), lambda i: (i, 0)),
            pl.BlockSpec((t1, 1), lambda i: (i, 0)),
            pl.BlockSpec((t1, 1), lambda i: (i, 0)),
            pl.BlockSpec((t1, 1), lambda i: (i, 0)),
            pl.BlockSpec((1, n_sub, num_experts), lambda i: (i, 0, 0)),
            pl.BlockSpec((1, n_sub, num_experts), lambda i: (i, 0, 0)),
            pl.BlockSpec((1, 1, num_experts), lambda i: (i, 0, 0)),
        ),
        out_shape=(
            jax.ShapeDtypeStruct((num_tokens, 1), jnp.int32),
            jax.ShapeDtypeStruct((num_tokens, 1), jnp.int32),
            jax.ShapeDtypeStruct((num_tokens, 1), jnp.float32),
            jax.ShapeDtypeStruct((num_tokens, 1), jnp.float32),
            jax.ShapeDtypeStruct((nt1, n_sub, num_experts), jnp.int32),
            jax.ShapeDtypeStruct((nt1, n_sub, num_experts), jnp.int32),
            jax.ShapeDtypeStruct((nt1, 1, num_experts), jnp.float32),
        ),
        compiler_params=cparams,
    )(x_in, w_in, gumbel)

    # ---- tiny XLA glue: per-chunk offsets, totals, aux loss (O(num_chunks * E)) ----
    cnt1_chunks = cnt1_t.reshape(nt2, num_experts)                            # (nt2, E) i32
    cnt2_chunks = cnt2_t.reshape(nt2, num_experts)

    cnt1_total = jnp.sum(cnt1_chunks, axis=0)                                 # (E,)
    cnt2_total = jnp.sum(cnt2_chunks, axis=0)
    gsum_total = jnp.sum(gsum_t[:, 0, :], axis=0)

    off1 = jnp.cumsum(cnt1_chunks, axis=0) - cnt1_chunks                      # exclusive prefix
    off2 = jnp.cumsum(cnt2_chunks, axis=0) - cnt2_chunks + cnt1_total[None, :]

    inv_t = jnp.float32(1.0 / num_tokens)
    # l_aux = mean(me * ce) * E^2  ==  sum(me * ce) * E
    l_aux = jnp.sum((gsum_total * inv_t)
                    * (cnt1_total.astype(jnp.float32) * inv_t)) * jnp.float32(num_experts)

    # ---- pass 2: locations / capacity / combine weights ----
    combine_weights, dispatch_i8 = pl.pallas_call(
        functools.partial(_combine_kernel, capacity=capacity,
                          num_experts=num_experts, inner=inner),
        grid=(nt2,),
        in_specs=[
            pl.BlockSpec((t2, 1), lambda i: (i, 0)),
            pl.BlockSpec((t2, 1), lambda i: (i, 0)),
            pl.BlockSpec((t2, 1), lambda i: (i, 0)),
            pl.BlockSpec((t2, 1), lambda i: (i, 0)),
            pl.BlockSpec((1, 1, num_experts), lambda i: (i, 0, 0)),
            pl.BlockSpec((1, 1, num_experts), lambda i: (i, 0, 0)),
        ],
        out_specs=(
            pl.BlockSpec((t2, num_experts, capacity), lambda i: (i, 0, 0)),
            pl.BlockSpec((t2, num_experts, capacity), lambda i: (i, 0, 0)),
        ),
        out_shape=(
            jax.ShapeDtypeStruct((num_tokens, num_experts, capacity), jnp.float32),
            jax.ShapeDtypeStruct((num_tokens, num_experts, capacity), jnp.int8),
        ),
        compiler_params=cparams,
    )(idx1, idx2, g1, g2, off1[:, None, :], off2[:, None, :])

    # TODO(synk): a native bool kernel output would save this (cheap, 1-byte) cast pass.
    dispatch_mask = dispatch_i8.astype(jnp.bool_)

    metadata = {
        "expert1_adress_tokens_count": cnt1_total,
        "expert2_adress_tokens_count": cnt2_total,
        "l_aux": l_aux,
    }
    return l_aux, combine_weights, dispatch_mask, metadata


# --------------------------------------------------------------------------------------
# self-test
# --------------------------------------------------------------------------------------
def _check_case(T, E, capacity, l_aux, combine, dispatch, meta):
    assert combine.shape == (T, E, capacity)
    assert dispatch.shape == (T, E, capacity)
    assert dispatch.dtype == jnp.bool_
    assert bool(jnp.isfinite(l_aux))
    assert bool(jnp.all(jnp.isfinite(combine)))
    assert bool(jnp.all(combine >= 0.0))
    # dispatch is exactly the nonzero support of combine
    assert bool(jnp.all(dispatch == (combine > 0.0)))
    # every (expert, capacity-slot) is used by at most one token
    assert bool(jnp.all(jnp.sum(dispatch, axis=0) <= 1))
    # a token's combine weights sum to 1 iff it kept at least one expert, and it is
    # dispatched to at most two (expert, slot) pairs
    per_tok = jnp.sum(dispatch, axis=(1, 2))
    row = jnp.sum(combine, axis=(1, 2))
    assert bool(jnp.all(jnp.abs(row - (per_tok > 0).astype(jnp.float32)) < 1e-3))
    assert bool(jnp.all(per_tok <= 2))
    # pre-dropping per-expert token counts each sum to the number of tokens
    assert int(jnp.sum(meta["expert1_adress_tokens_count"])) == T
    assert int(jnp.sum(meta["expert2_adress_tokens_count"])) == T
    if capacity >= T:
        # a top-1 choice can never be dropped when capacity >= num_tokens
        assert bool(jnp.all(per_tok >= 1))


if __name__ == "__main__":
    key = jax.random.PRNGKey(0)

    def make_inputs(k, T, D, E, orthogonal=False):
        k1, k2, k3, k4 = jax.random.split(k, 4)
        # gate input [tokens, model_dim]
        x = jax.random.normal(k1, (T, D), jnp.float32)
        # dim_reduction = nn.Linear(model_dim, 4, bias=False); passed transposed [D, 4]
        bound = 1.0 / math.sqrt(D)
        w_reduce = jax.random.uniform(k2, (4, D), jnp.float32, minval=-bound, maxval=bound)
        # expert_centroids [E, 4]; orthogonal init (gain=0.32) for the module-faithful case
        if orthogonal:
            a = jax.random.normal(k3, (E, 4), jnp.float32)
            q, r = jnp.linalg.qr(a)
            q = q * jnp.sign(jnp.diagonal(r))[None, :]
            centroids = 0.32 * q
        else:
            centroids = 0.32 * jax.random.normal(k3, (E, 4), jnp.float32)
        # Gumbel noise for second_expert_policy='sampling'
        gumbel = jax.random.gumbel(k4, (T, E), jnp.float32)
        return x, w_reduce.T, centroids.T, gumbel

    cases = [
        # (T, D, E, eval capacity fraction, orthogonal centroid init)
        (8, 32, 8, 1.0, True),      # tiny, matches the module's default init recipe
        (2048, 64, 8, 1.0, False),  # multi-tile pass 2, n_sub > 1, 2 capacity chunks
        (256, 32, 8, 0.3, False),   # ragged capacity (77), token-dropping path
    ]
    for (T, D, E, frac, ortho) in cases:
        key, sub = jax.random.split(key)
        x, w_reduce_t, centroids_t, gumbel = make_inputs(sub, T, D, E, orthogonal=ortho)
        l_aux, combine, dispatch, meta = top2gate_forward(
            x, w_reduce_t, centroids_t, gumbel,
            eval_mode=True, moe_eval_capacity_token_fraction=frac)
        jax.block_until_ready((l_aux, combine, dispatch,
                               meta["expert1_adress_tokens_count"],
                               meta["expert2_adress_tokens_count"]))
        capacity = math.ceil(frac * T)
        _check_case(T, E, capacity, l_aux, combine, dispatch, meta)

    print("KERNEL_OK")
</pallas_src>

<mosaic_0001>
module attributes {stable_mosaic.version = 11 : i64} {
  func.func @_routing_kernel(%arg0: i32, %arg1: memref<8x32xf32, #tpu.memory_space<vmem>>, %arg2: memref<32x8xf32, #tpu.memory_space<vmem>>, %arg3: memref<8x8xf32, #tpu.memory_space<vmem>>, %arg4: memref<8x1xi32, #tpu.memory_space<vmem>>, %arg5: memref<8x1xi32, #tpu.memory_space<vmem>>, %arg6: memref<8x1xf32, #tpu.memory_space<vmem>>, %arg7: memref<8x1xf32, #tpu.memory_space<vmem>>, %arg8: memref<1x1x8xi32, #tpu.memory_space<vmem>>, %arg9: memref<1x1x8xi32, #tpu.memory_space<vmem>>, %arg10: memref<1x1x8xf32, #tpu.memory_space<vmem>>) attributes {dimension_semantics = [#tpu.dimension_semantics<parallel>], iteration_bounds = array<i64: 1>, scalar_prefetch = 0 : i64, scratch_operands = 0 : i64, tpu.core_type = #tpu.core_type<tc>, window_params = [{transform_indices = @transform_0, window_bounds = array<i64: 8, 32>}, {pipeline_mode = #tpu.pipeline_mode<synchronous>, transform_indices = @transform_1, window_bounds = array<i64: 32, 8>}, {transform_indices = @transform_2, window_bounds = array<i64: 8, 8>}, {transform_indices = @transform_3, window_bounds = array<i64: 8, 1>}, {transform_indices = @transform_4, window_bounds = array<i64: 8, 1>}, {transform_indices = @transform_5, window_bounds = array<i64: 8, 1>}, {transform_indices = @transform_6, window_bounds = array<i64: 8, 1>}, {transform_indices = @transform_7, window_bounds = array<i64: 1, 1, 8>}, {transform_indices = @transform_8, window_bounds = array<i64: 1, 1, 8>}, {transform_indices = @transform_9, window_bounds = array<i64: 1, 1, 8>}]} {
    %c0 = arith.constant 0 : index
    %c0_0 = arith.constant 0 : index
    %0 = vector.load %arg1[%c0, %c0_0] : memref<8x32xf32, #tpu.memory_space<vmem>>, vector<8x32xf32>
    %c0_1 = arith.constant 0 : index
    %c0_2 = arith.constant 0 : index
    %1 = vector.load %arg2[%c0_1, %c0_2] : memref<32x8xf32, #tpu.memory_space<vmem>>, vector<32x8xf32>
    %cst = arith.constant dense<0.000000e+00> : vector<8x8xf32>
    %2 = tpu.matmul %0, %1, %cst {dimension_numbers = #tpu.dot_dimension_numbers<[1], [0], [0], [1], [0, 0, 1, 1], [], []>} : vector<8x32xf32>, vector<32x8xf32>, vector<8x8xf32> -> vector<8x8xf32>
    %3 = math.absf %2 : vector<8x8xf32>
    %cst_3 = arith.constant 0x7F800000 : f32
    %4 = vector.broadcast %cst_3 : f32 to vector<8x8xf32>
    %5 = arith.cmpf olt, %3, %4 : vector<8x8xf32>
    %cst_4 = arith.constant 0x7F800000 : f32
    %6 = vector.broadcast %cst_4 : f32 to vector<8x8xf32>
    %7 = arith.select %5, %2, %6 : vector<8x8xi1>, vector<8x8xf32>
    %8 = vector.shape_cast %7 : vector<8x8xf32> to vector<1x8x8xf32>
    %cst_5 = arith.constant dense<0x7F800000> : vector<1xf32>
    %9 = vector.multi_reduction <minimumf>, %8, %cst_5 [1, 2] : vector<1x8x8xf32> to vector<1xf32>
    %10 = vector.shape_cast %9 : vector<1xf32> to vector<1x1x1xf32>
    %11 = vector.extract %10[0, 0, 0] : f32 from vector<1x1x1xf32>
    %12 = vector.broadcast %11 : f32 to vector<1x1xf32>
    %cst_6 = arith.constant 0x7F800000 : f32
    %13 = vector.broadcast %cst_6 : f32 to vector<1x1xf32>
    %14 = arith.cmpf olt, %12, %13 : vector<1x1xf32>
    %cst_7 = arith.constant 0.000000e+00 : f32
    %15 = vector.broadcast %cst_7 : f32 to vector<1x1xf32>
    %16 = arith.select %14, %12, %15 : vector<1x1xi1>, vector<1x1xf32>
    %17 = vector.shape_cast %16 : vector<1x1xf32> to vector<1x1xf32>
    %18 = vector.broadcast %17 : vector<1x1xf32> to vector<8x8xf32>
    %19 = arith.select %5, %2, %18 : vector<8x8xi1>, vector<8x8xf32>
    %cst_8 = arith.constant dense<0xFF800000> : vector<8xf32>
    %20 = vector.multi_reduction <maximumf>, %19, %cst_8 [1] : vector<8x8xf32> to vector<8xf32>
    %21 = vector.shape_cast %20 : vector<8xf32> to vector<8x1xf32>
    %22 = vector.broadcast %21 : vector<8x1xf32> to vector<8x8xf32>
    %23 = arith.subf %19, %22 : vector<8x8xf32>
    %24 = math.exp %23 : vector<8x8xf32>
    %cst_9 = arith.constant dense<0.000000e+00> : vector<8xf32>
    %25 = vector.multi_reduction <add>, %24, %cst_9 [1] : vector<8x8xf32> to vector<8xf32>
    %26 = vector.shape_cast %25 : vector<8xf32> to vector<8x1xf32>
    %27 = vector.broadcast %26 : vector<8x1xf32> to vector<8x8xf32>
    %28 = arith.divf %24, %27 : vector<8x8xf32>
    %29 = tpu.iota {dimensions = array<i32: 1>} : vector<8x8xi32>
    %cst_10 = arith.constant dense<0xFF800000> : vector<8xf32>
    %30 = vector.multi_reduction <maximumf>, %28, %cst_10 [1] : vector<8x8xf32> to vector<8xf32>
    %31 = vector.shape_cast %30 : vector<8xf32> to vector<8x1xf32>
    %32 = vector.broadcast %31 : vector<8x1xf32> to vector<8x8xf32>
    %33 = arith.cmpf oeq, %28, %32 : vector<8x8xf32>
    %c8_i32 = arith.constant 8 : i32
    %34 = vector.broadcast %c8_i32 : i32 to vector<8x8xi32>
    %35 = arith.select %33, %29, %34 : vector<8x8xi1>, vector<8x8xi32>
    %cst_11 = arith.constant dense<2147483647> : vector<8xi32>
    %36 = vector.multi_reduction <minsi>, %35, %cst_11 [1] : vector<8x8xi32> to vector<8xi32>
    %37 = vector.shape_cast %36 : vector<8xi32> to vector<8x1xi32>
    %38 = vector.broadcast %37 : vector<8x1xi32> to vector<8x8xi32>
    %39 = arith.cmpi eq, %29, %38 : vector<8x8xi32>
    %c0_12 = arith.constant 0 : index
    %c0_13 = arith.constant 0 : index
    %40 = vector.load %arg3[%c0_12, %c0_13] : memref<8x8xf32, #tpu.memory_space<vmem>>, vector<8x8xf32>
    %41 = arith.addf %19, %40 : vector<8x8xf32>
    %cst_14 = arith.constant 0xFF800000 : f32
    %42 = vector.broadcast %cst_14 : f32 to vector<8x8xf32>
    %43 = arith.select %39, %42, %41 : vector<8x8xi1>, vector<8x8xf32>
    %cst_15 = arith.constant dense<0xFF800000> : vector<8xf32>
    %44 = vector.multi_reduction <maximumf>, %43, %cst_15 [1] : vector<8x8xf32> to vector<8xf32>
    %45 = vector.shape_cast %44 : vector<8xf32> to vector<8x1xf32>
    %46 = vector.broadcast %45 : vector<8x1xf32> to vector<8x8xf32>
    %47 = arith.cmpf oeq, %43, %46 : vector<8x8xf32>
    %c8_i32_16 = arith.constant 8 : i32
    %48 = vector.broadcast %c8_i32_16 : i32 to vector<8x8xi32>
    %49 = arith.select %47, %29, %48 : vector<8x8xi1>, vector<8x8xi32>
    %cst_17 = arith.constant dense<2147483647> : vector<8xi32>
    %50 = vector.multi_reduction <minsi>, %49, %cst_17 [1] : vector<8x8xi32> to vector<8xi32>
    %51 = vector.shape_cast %50 : vector<8xi32> to vector<8x1xi32>
    %52 = vector.broadcast %51 : vector<8x1xi32> to vector<8x8xi32>
    %53 = arith.cmpi eq, %29, %52 : vector<8x8xi32>
    %c0_18 = arith.constant 0 : index
    %c0_19 = arith.constant 0 : index
    %54 = vector.load %arg4[%c0_18, %c0_19] : memref<8x1xi32, #tpu.memory_space<vmem>>, vector<8x1xi32>
    tpu.vector_store %arg4[%c0_18, %c0_19], %37 {strides = array<i32>} : memref<8x1xi32, #tpu.memory_space<vmem>>, vector<8x1xi32>,
    %c0_20 = arith.constant 0 : index
    %c0_21 = arith.constant 0 : index
    %55 = vector.load %arg5[%c0_20, %c0_21] : memref<8x1xi32, #tpu.memory_space<vmem>>, vector<8x1xi32>
    tpu.vector_store %arg5[%c0_20, %c0_21], %51 {strides = array<i32>} : memref<8x1xi32, #tpu.memory_space<vmem>>, vector<8x1xi32>,
    %cst_22 = arith.constant 0.000000e+00 : f32
    %56 = vector.broadcast %cst_22 : f32 to vector<8x8xf32>
    %57 = arith.select %39, %28, %56 : vector<8x8xi1>, vector<8x8xf32>
    %cst_23 = arith.constant dense<0.000000e+00> : vector<8xf32>
    %58 = vector.multi_reduction <add>, %57, %cst_23 [1] : vector<8x8xf32> to vector<8xf32>
    %59 = vector.shape_cast %58 : vector<8xf32> to vector<8x1xf32>
    %c0_24 = arith.constant 0 : index
    %c0_25 = arith.constant 0 : index
    %60 = vector.load %arg6[%c0_24, %c0_25] : memref<8x1xf32, #tpu.memory_space<vmem>>, vector<8x1xf32>
    tpu.vector_store %arg6[%c0_24, %c0_25], %59 {strides = array<i32>} : memref<8x1xf32, #tpu.memory_space<vmem>>, vector<8x1xf32>,
    %cst_26 = arith.constant 0.000000e+00 : f32
    %61 = vector.broadcast %cst_26 : f32 to vector<8x8xf32>
    %62 = arith.select %53, %28, %61 : vector<8x8xi1>, vector<8x8xf32>
    %cst_27 = arith.constant dense<0.000000e+00> : vector<8xf32>
    %63 = vector.multi_reduction <add>, %62, %cst_27 [1] : vector<8x8xf32> to vector<8xf32>
    %64 = vector.shape_cast %63 : vector<8xf32> to vector<8x1xf32>
    %c0_28 = arith.constant 0 : index
    %c0_29 = arith.constant 0 : index
    %65 = vector.load %arg7[%c0_28, %c0_29] : memref<8x1xf32, #tpu.memory_space<vmem>>, vector<8x1xf32>
    tpu.vector_store %arg7[%c0_28, %c0_29], %64 {strides = array<i32>} : memref<8x1xf32, #tpu.memory_space<vmem>>, vector<8x1xf32>,
    %66 = arith.extui %39 : vector<8x8xi1> to vector<8x8xi32>
    %67 = arith.sitofp %66 : vector<8x8xi32> to vector<8x8xf32>
    %68 = arith.extui %53 : vector<8x8xi1> to vector<8x8xi32>
    %69 = arith.sitofp %68 : vector<8x8xi32> to vector<8x8xf32>
    %cst_30 = arith.constant dense<0.000000e+00> : vector<8xf32>
    %70 = vector.multi_reduction <add>, %67, %cst_30 [0] : vector<8x8xf32> to vector<8xf32>
    %71 = vector.shape_cast %70 : vector<8xf32> to vector<1x8xf32>
    %cst_31 = arith.constant dense<0.000000e+00> : vector<8xf32>
    %72 = vector.multi_reduction <add>, %69, %cst_31 [0] : vector<8x8xf32> to vector<8xf32>
    %73 = vector.shape_cast %72 : vector<8xf32> to vector<1x8xf32>
    %74 = vector.shape_cast %71 : vector<1x8xf32> to vector<1x1x8xf32>
    %75 = arith.fptosi %74 : vector<1x1x8xf32> to vector<1x1x8xi32>
    %c0_32 = arith.constant 0 : index
    %c0_33 = arith.constant 0 : index
    %c0_34 = arith.constant 0 : index
    %76 = vector.load %arg8[%c0_32, %c0_33, %c0_34] : memref<1x1x8xi32, #tpu.memory_space<vmem>>, vector<1x1x8xi32>
    tpu.vector_store %arg8[%c0_32, %c0_33, %c0_34], %75 {strides = array<i32>} : memref<1x1x8xi32, #tpu.memory_space<vmem>>, vector<1x1x8xi32>,
    %77 = vector.shape_cast %73 : vector<1x8xf32> to vector<1x1x8xf32>
    %78 = arith.fptosi %77 : vector<1x1x8xf32> to vector<1x1x8xi32>
    %c0_35 = arith.constant 0 : index
    %c0_36 = arith.constant 0 : index
    %c0_37 = arith.constant 0 : index
    %79 = vector.load %arg9[%c0_35, %c0_36, %c0_37] : memref<1x1x8xi32, #tpu.memory_space<vmem>>, vector<1x1x8xi32>
    tpu.vector_store %arg9[%c0_35, %c0_36, %c0_37], %78 {strides = array<i32>} : memref<1x1x8xi32, #tpu.memory_space<vmem>>, vector<1x1x8xi32>,
    %cst_38 = arith.constant dense<0.000000e+00> : vector<8xf32>
    %80 = vector.multi_reduction <add>, %28, %cst_38 [0] : vector<8x8xf32> to vector<8xf32>
    %81 = vector.shape_cast %80 : vector<8xf32> to vector<1x8xf32>
    %82 = vector.shape_cast %81 : vector<1x8xf32> to vector<1x1x8xf32>
    %c0_39 = arith.constant 0 : index
    %c0_40 = arith.constant 0 : index
    %c0_41 = arith.constant 0 : index
    %83 = vector.load %arg10[%c0_39, %c0_40, %c0_41] : memref<1x1x8xf32, #tpu.memory_space<vmem>>, vector<1x1x8xf32>
    tpu.vector_store %arg10[%c0_39, %c0_40, %c0_41], %82 {strides = array<i32>} : memref<1x1x8xf32, #tpu.memory_space<vmem>>, vector<1x1x8xf32>,
    return
  }
  func.func @transform_0(%arg0: i32) -> (i32, i32) {
    %c0_i32 = arith.constant 0 : i32
    %c0_i32_0 = arith.constant 0 : i32
    return %arg0, %c0_i32 : i32, i32
  }
  func.func @transform_1(%arg0: i32) -> (i32, i32) {
    %c0_i32 = arith.constant 0 : i32
    %c0_i32_0 = arith.constant 0 : i32
    %c0_i32_1 = arith.constant 0 : i32
    return %c0_i32, %c0_i32_0 : i32, i32
  }
  func.func @transform_2(%arg0: i32) -> (i32, i32) {
    %c0_i32 = arith.constant 0 : i32
    %c0_i32_0 = arith.constant 0 : i32
    return %arg0, %c0_i32 : i32, i32
  }
  func.func @transform_3(%arg0: i32) -> (i32, i32) {
    %c0_i32 = arith.constant 0 : i32
    %c0_i32_0 = arith.constant 0 : i32
    return %arg0, %c0_i32 : i32, i32
  }
  func.func @transform_4(%arg0: i32) -> (i32, i32) {
    %c0_i32 = arith.constant 0 : i32
    %c0_i32_0 = arith.constant 0 : i32
    return %arg0, %c0_i32 : i32, i32
  }
  func.func @transform_5(%arg0: i32) -> (i32, i32) {
    %c0_i32 = arith.constant 0 : i32
    %c0_i32_0 = arith.constant 0 : i32
    return %arg0, %c0_i32 : i32, i32
  }
  func.func @transform_6(%arg0: i32) -> (i32, i32) {
    %c0_i32 = arith.constant 0 : i32
    %c0_i32_0 = arith.constant 0 : i32
    return %arg0, %c0_i32 : i32, i32
  }
  func.func @transform_7(%arg0: i32) -> (i32, i32, i32) {
    %c0_i32 = arith.constant 0 : i32
    %c0_i32_0 = arith.constant 0 : i32
    %c0_i32_1 = arith.constant 0 : i32
    return %arg0, %c0_i32, %c0_i32_0 : i32, i32, i32
  }
  func.func @transform_8(%arg0: i32) -> (i32, i32, i32) {
    %c0_i32 = arith.constant 0 : i32
    %c0_i32_0 = arith.constant 0 : i32
    %c0_i32_1 = arith.constant 0 : i32
    return %arg0, %c0_i32, %c0_i32_0 : i32, i32, i32
  }
  func.func @transform_9(%arg0: i32) -> (i32, i32, i32) {
    %c0_i32 = arith.constant 0 : i32
    %c0_i32_0 = arith.constant 0 : i32
    %c0_i32_1 = arith.constant 0 : i32
    return %arg0, %c0_i32, %c0_i32_0 : i32, i32, i32
  }
}

</mosaic_0001>

<bundles_post_ra>
// kernel: tpu_custom_call.1
= control target key start
LH: loop header
LB: loop body
LE: loop exit
PB: predicated region body
PF: predicated region fallthrough
CT: control target
= control target key end

     0   :  { %15 = vsyncpa [#allocation3], 0  ;;  %v390_v3 = vmov 0.0|0.0   ;;  %vm391_vm0 = vmmov 0   ;;  %v392_v6 = vmov 0.0   ;;  %s569_s0 = inlined_call_operand.vmem [shape: f32[8,32], index: 0, kind: input, shape index: {}]   ;;  %s570_s1 = inlined_call_operand.vmem [shape: f32[32,8], index: 1, kind: input, shape index: {}]   ;;  %s571_s2 = inlined_call_operand.vmem [shape: f32[8,8], index: 2, kind: input, shape index: {}]   ;;  %s572_s3 = inlined_call_operand.vmem [shape: s32[8,1], index: 3, kind: output, shape index: {0}]   ;;  %s573_s4 = inlined_call_operand.vmem [shape: s32[8,1], index: 4, kind: output, shape index: {1}]   ;;  %s574_s5 = inlined_call_operand.vmem [shape: f32[8,1], index: 5, kind: output, shape index: {2}]   ;;  %s575_s6 = inlined_call_operand.vmem [shape: f32[8,1], index: 6, kind: output, shape index: {3}]   ;;  %s576_s7 = inlined_call_operand.hbm [shape: s32[1,1,8], index: 7, kind: output, shape index: {4}]   ;;  %s577_s8 = inlined_call_operand.hbm [shape: s32[1,1,8], index: 8, kind: output, shape index: {5}]   ;;  %s578_s9 = inlined_call_operand.hbm [shape: f32[1,1,8], index: 9, kind: output, shape index: {6}]  }
   0x1   :  { %v24_v0 = vld [vmem:[%s570_s1] sm:$0xff]  ;;  %v25_v1 = vld [vmem:[%s570_s1 + $0x8] sm:$0xff]  ;;  %v26_v2 = vld [vmem:[%s570_s1 + $0x10] sm:$0xff]  ;;  %298 = vmatprep.subr.bf16.mxu0 %v390_v3  ;;  %295 = vmatprep.mubr.msk.f32.mxu0 %vm391_vm0, %v392_v6 }
   0x2   :  { %v299_v4 = vpack.c.bf16 %v25_v1, %v24_v0  ;;  %v27_v5 = vld [vmem:[%s570_s1 + $0x18] sm:$0xff] }
   0x3   :  { %16 = vsyncpa [#allocation5], 0  ;;  %v302_v7 = vpack.c.bf16 %v27_v5, %v26_v2  ;;  %v23_v8 = vld [vmem:[%s569_s0] sm:$0xff]  ;;  %vm28_vm1 = vcmask 261120   ;;  %vm105_vm2 = vcmask 64512   ;;  %vm210_vm5 = vcmask 57344  }
   0x4   :  { %300 = vmatpush3.bf16.msra.mxu0 %v299_v4  ;;  %v131_v42 = vlaneseq  ;;  %v154_v57 = vld [vmem:[%s571_s2] sm:$0xff]  ;;  %vm178_vm8 = vcmask 7168  }
   0x5   :  { %301 = vmatprep.subr.bf16.mxu0 %v390_v3 }
   0x6   :  { %v480_v43 = vand.u32 127, %v131_v42 }
   0x8   :  { %303 = vmatpush3.bf16.msra.mxu0 %v302_v7 }
   0xb   :  { %296 = vmatmul.mubr.msk.f32.vlgmr.msra.gmra.mrb[0].mxu0 %vm28_vm1, %v23_v8 }
  0xde   :  { %v98_v9 = vpop.f32.mrb[0].mxu0 }
  0xdf   :  { %v297_v10 = vpop.f32.mrb[1].mxu0  ;;  %v102_v11 = vand.u32 2147483647, %v98_v9 }
  0xe1   :  { %vm462_vm3 = vcmp.lt.f32.partialorder %v102_v11, inf }
  0xe2   :  { %v104_v13 = vsel %vm462_vm3, %v98_v9, inf }
  0xe3   :  { %v106_v14 = vsel %vm105_vm2, %v104_v13, inf }
  0xe4   :  { %107 = vmin.xlane.f32.xlu0 %v106_v14 }
 0x171   :  { %v108_v15 = vpop.xlane.xlu0 %107 }
 0x172   :  { %v109_v16 = vrot.slane %v108_v15, 4 }
 0x174   :  { %v110_v17 = vmin.f32 %v108_v15, %v109_v16 }
 0x176   :  { %v111_v18 = vrot.slane %v110_v17, 2 }
 0x178   :  { %v112_v19 = vmin.f32 %v110_v17, %v111_v18 }
 0x17a   :  { %v113_v20 = vrot.slane %v112_v19, 1 }
 0x17c   :  { %v114_v21 = vmin.f32 %v112_v19, %v113_v20 }
 0x17e   :  { %304 = vpush %v114_v21 }
 0x1af   :  { %s305_s0 = spop %304 }
 0x1b0   :  { %v116_v22 = vstv %s305_s0 }
 0x1b1   :  { %vm117_vm4 = vcmp.lt.f32.partialorder %v116_v22, inf }
 0x1b2   :  { %v118_v23 = vsel %vm117_vm4, %v116_v22, 0.0 }
 0x1b3   :  { %v119_v24 = vsel %vm462_vm3, %v98_v9, %v118_v23 }
 0x1b4   :  { %v120_v25 = vsel %vm105_vm2, %v119_v24, -inf  ;;  %v155_v59 = vadd.f32 %v154_v57, %v119_v24 }
 0x1b5   :  { %121 = vmax.xlane.f32.xlu0 %v120_v25 }
 0x242   :  { %v122_v26 = vpop.xlane.xlu0 %121 }
 0x243   :  { %v123_v27 = vsub.f32 %v119_v24, %v122_v26 }
 0x245   :  { %v124_v28 = vmul.f32 1.442695, %v123_v27 }
 0x247   :  { %316 = vpow2.f32 %v124_v28 }
 0x251   :  { %v317_v29 = vpop.eup %316 }
 0x252   :  { %v126_v30 = vsel %vm105_vm2, %v317_v29, 0.0 }
 0x253   :  { %127 = vadd.xlane.f32.xlu1 %v126_v30 }
 0x2e0   :  { %v128_v31 = vpop.xlane.xlu1 %127 }
 0x2e1   :  { %318 = vrcp.f32 %v128_v31 }
 0x2eb   :  { %v319_v32 = vpop.eup %318 }
 0x2ec   :  { %v473_v33 = vmul.f32 %v319_v32, %v317_v29 }
 0x2ee   :  { %v133_v34 = vsel %vm105_vm2, %v473_v33, -inf  ;;  %v214_v35 = vsel %vm105_vm2, %v473_v33, 0.0 }
 0x2ef   :  { %134 = vmax.xlane.f32.xlu1 %v133_v34  ;;  %v215_v36 = vrot.slane %v214_v35, 4 }
 0x2f1   :  { %v216_v37 = vadd.f32 %v215_v36, %v214_v35 }
 0x2f3   :  { %v217_v38 = vrot.slane %v216_v37, 2 }
 0x2f5   :  { %v218_v39 = vadd.f32 %v217_v38, %v216_v37 }
 0x2f7   :  { %v219_v40 = vrot.slane %v218_v39, 1 }
 0x2f9   :  { %v220_v41 = vadd.f32 %v219_v40, %v218_v39 }
 0x2fb   :  { %221 = vst.msk [vmem:[#allocation6] sm:$0x1] %vm210_vm5, %v220_v41 }
 0x37c   :  { %v135_v44 = vpop.xlane.xlu1 %134 }
 0x37d   :  { %vm136_vm6 = vcmp.eq.f32.partialorder %v473_v33, %v135_v44 }
 0x37e   :  { %v137_v45 = vsel %vm136_vm6, %v480_v43, 8 }
 0x37f   :  { %v138_v46 = vsel %vm105_vm2, %v137_v45, 2147483647 }
 0x380   :  { %v140_v47 = vshra.s32 %v138_v46, 16  ;;  %v139_v49 = vand.u32 65535, %v138_v46 }
 0x382   :  { %v142_v48 = vcvt.s32.f32 %v140_v47  ;;  %v141_v51 = vcvt.s32.f32 %v139_v49 }
 0x384   :  { %143 = vmin.xlane.f32.xlu0 %v142_v48 }
 0x411   :  { %v144_v50 = vpop.xlane.xlu0 %143 }
 0x412   :  { %vm145_vm7 = vcmp.eq.f32.partialorder %v142_v48, %v144_v50  ;;  %v150_v53 = vcvt.f32.s32 %v144_v50 }
 0x413   :  { %v146_v52 = vsel %vm145_vm7, %v141_v51, inf }
 0x414   :  { %147 = vmin.xlane.f32.xlu1 %v146_v52  ;;  %v151_v55 = vshll.u32 %v150_v53, 16 }
 0x4a1   :  { %v148_v54 = vpop.xlane.xlu1 %147 }
 0x4a2   :  { %v149_v56 = vcvt.f32.s32 %v148_v54 }
 0x4a4   :  { %v152_v58 = vadd.s32 %v151_v55, %v149_v56 }
 0x4a6   :  { %179 = vst.msk [vmem:[%s572_s3] sm:$0xff] %vm178_vm8, %v152_v58  ;;  %vm153_vm9 = vcmp.eq.s32.totalorder %v480_v43, %v152_v58 }
 0x4a7   :  { %v156_v60 = vsel %vm153_vm9, -inf, %v155_v59  ;;  %v280_v61 = vsel %vm153_vm9, 1.0, %v392_v6  ;;  %v181_v14 = vsel %vm153_vm9, %v473_v33, 0.0 }
 0x4a8   :  { %v157_v62 = vsel %vm105_vm2, %v156_v60, -inf  ;;  %v195_v63 = vsel %vm105_vm2, %v280_v61, 0.0  ;;  %v182_v15 = vsel %vm105_vm2, %v181_v14, 0.0 }
 0x4a9   :  { %v196_v0 = vrot.slane %v195_v63, 4  ;;  %158 = vmax.xlane.f32.xlu0 %v157_v62 }
 0x4ab   :  { %v197_v1 = vadd.f32 %v196_v0, %v195_v63 }
 0x4ad   :  { %v198_v2 = vrot.slane %v197_v1, 2 }
 0x4af   :  { %v199_v3 = vadd.f32 %v198_v2, %v197_v1 }
 0x4b1   :  { %v200_v4 = vrot.slane %v199_v3, 1 }
 0x4b3   :  { %v201_v5 = vadd.f32 %v200_v4, %v199_v3 }
 0x4b5   :  { %v306_v7 = vtrunc.f32 %v201_v5 }
 0x4b7   :  { %v307_v8 = vcvt.f32.s32 %v306_v7 }
 0x4b9   :  { %211 = vst.msk [vmem:[#allocation2] sm:$0x1] %vm210_vm5, %v307_v8 }
 0x536   :  { %v159_v9 = vpop.xlane.xlu0 %158 }
 0x537   :  { %vm160_vm10 = vcmp.eq.f32.partialorder %v156_v60, %v159_v9 }
 0x538   :  { %v161_v10 = vsel %vm160_vm10, %v480_v43, 8 }
 0x539   :  { %v162_v11 = vsel %vm105_vm2, %v161_v10, 2147483647 }
 0x53a   :  { %v164_v12 = vshra.s32 %v162_v11, 16  ;;  %v163_v16 = vand.u32 65535, %v162_v11 }
 0x53c   :  { %v166_v13 = vcvt.s32.f32 %v164_v12  ;;  %v165_v18 = vcvt.s32.f32 %v163_v16 }
 0x53e   :  { %167 = vmin.xlane.f32.xlu1 %v166_v13 }
 0x542   :  { %183 = vadd.xlane.f32.xlu1 %v182_v15 }
 0x5cb   :  { %v168_v17 = vpop.xlane.xlu1 %167 }
 0x5cc   :  { %vm169_vm11 = vcmp.eq.f32.partialorder %v166_v13, %v168_v17  ;;  %v174_v21 = vcvt.f32.s32 %v168_v17 }
 0x5cd   :  { %v170_v19 = vsel %vm169_vm11, %v165_v18, inf }
 0x5ce   :  { %171 = vmin.xlane.f32.xlu0 %v170_v19  ;;  %v175_v23 = vshll.u32 %v174_v21, 16 }
 0x5cf   :  { %v184_v20 = vpop.xlane.xlu1 %183 }
 0x5d0   :  { %185 = vst.msk [vmem:[%s574_s5] sm:$0xff] %vm178_vm8, %v184_v20  ;;  %s393_s5 = smov [#allocation4]  }
 0x5d1   :  { %s246_s24 = sshll.u32 %s393_s5, 4  ;;  %s520_s24 = int_to_ptr.vmem [resolvable:$true] %s246_s24 }
 0x65b   :  { %v172_v22 = vpop.xlane.xlu0 %171 }
 0x65c   :  { %v173_v24 = vcvt.f32.s32 %v172_v22 }
 0x65e   :  { %v176_v25 = vadd.s32 %v175_v23, %v173_v24 }
 0x660   :  { %180 = vst.msk [vmem:[%s573_s4] sm:$0xff] %vm178_vm8, %v176_v25  ;;  %vm177_vm12 = vcmp.eq.s32.totalorder %v480_v43, %v176_v25  ;;  %s394_s4 = smov [#allocation2]  }
 0x661   :  { %v186_v26 = vsel %vm177_vm12, %v473_v33, 0.0  ;;  %v281_v27 = vsel %vm177_vm12, 1.0, %v392_v6  ;;  %s236_s25 = sshll.u32 %s394_s4, 4  ;;  %s237_s25 = int_to_ptr.vmem [resolvable:$true] %s236_s25 }
 0x662   :  { %v187_v28 = vsel %vm105_vm2, %v186_v26, 0.0  ;;  %v202_v29 = vsel %vm105_vm2, %v281_v27, 0.0  ;;  %s320_s26 = scalar_lea.vmem %s237_s25, 16  ;;  %s324_s27 = scalar_lea.vmem %s237_s25, 32 }
 0x663   :  { %v203_v30 = vrot.slane %v202_v29, 4  ;;  %188 = vadd.xlane.f32.xlu0 %v187_v28  ;;  %p321_p0 = scmp.ne.s32.totalorder %s237_s25, %s320_s26  ;;  %p325_p1 = scmp.lt.s32.totalorder %s237_s25, %s237_s25 }
 0x664   :  { %p326_p2 = scmp.lt.s32.totalorder %s324_s27, %s320_s26 }
 0x665   :  { %v204_v31 = vadd.f32 %v203_v30, %v202_v29 }
 0x666   :  { %p327_p3 = por %p326_p2, %p325_p1 }
 0x667   :  { %v205_v32 = vrot.slane %v204_v31, 2 }
 0x668   :  { %p328_p4 = pnand %p327_p3, %p321_p0 }
 0x669   :  { %v206_v34 = vadd.f32 %v205_v32, %v204_v31 }
 0x66b   :  { %v207_v35 = vrot.slane %v206_v34, 1 }
 0x66d   :  { %v208_v36 = vadd.f32 %v207_v35, %v206_v34 }
 0x66f   :  { %v308_v37 = vtrunc.f32 %v208_v36 }
 0x671   :  { %v309_v6 = vcvt.f32.s32 %v308_v37 }
 0x672   :  { %331 = shalt.err (!%p328_p4)
}
 0x673   :  { %s332_s30 = scalar_lea.hbm %s576_s7, 16 }
 0x674   :  { %p333_p5 = scmp.ne.s32.totalorder %s576_s7, %s332_s30  ;;  %p336_p6 = scmp.lt.u32.totalorder %s332_s30, %s576_s7 }
 0x676   :  { %p338_p7 = pnand %p336_p6, %p333_p5 }
 0x678   :  { %341 = shalt.err (!%p338_p7)
}
 0x679   :  { %239 = dma.vmem_to_hbm [thread:$0]  %s237_s25, 16, %s576_s7, [#allocation3]   ;;  %213 = vst.msk [vmem:[#allocation4] sm:$0x1] %vm210_vm5, %v309_v6 }
 0x67a   :  { %s395_s16 = smov [#allocation6]   ;;  %s342_s18 = scalar_lea.vmem %s520_s24, 16 }
 0x67b   :  { %s256_s17 = sshll.u32 %s395_s16, 4  ;;  %p343_p8 = scmp.ne.s32.totalorder %s520_s24, %s342_s18  ;;  %s257_s17 = int_to_ptr.vmem [resolvable:$true] %s256_s17 }
 0x67c   :  { %s346_s0 = scalar_lea.vmem %s520_s24, 32  ;;  %p347_p9 = scmp.lt.s32.totalorder %s520_s24, %s520_s24 }
 0x67d   :  { %p348_p10 = scmp.lt.s32.totalorder %s346_s0, %s342_s18 }
 0x67f   :  { %p349_p11 = por %p348_p10, %p347_p9 }
 0x681   :  { %p350_p12 = pnand %p349_p11, %p343_p8 }
 0x683   :  { %353 = shalt.err (!%p350_p12)
}
 0x684   :  { %s354_s20 = scalar_lea.hbm %s577_s8, 16 }
 0x685   :  { %p355_p13 = scmp.ne.s32.totalorder %s577_s8, %s354_s20  ;;  %p358_p0 = scmp.lt.u32.totalorder %s354_s20, %s577_s8 }
 0x687   :  { %p360_p1 = pnand %p358_p0, %p355_p13 }
 0x689   :  { %363 = shalt.err (!%p360_p1)
}
 0x68a   :  { %249 = dma.vmem_to_hbm [thread:$0]  %s520_s24, 16, %s577_s8, [#allocation5]  }
 0x68b   :  { %s364_s5 = scalar_lea.vmem %s257_s17, 16  ;;  %s368_s4 = scalar_lea.vmem %s257_s17, 32 }
 0x68c   :  { %p365_p2 = scmp.ne.s32.totalorder %s257_s17, %s364_s5  ;;  %p369_p3 = scmp.lt.s32.totalorder %s257_s17, %s257_s17 }
 0x68d   :  { %p370_p4 = scmp.lt.s32.totalorder %s368_s4, %s364_s5 }
 0x68f   :  { %p371_p5 = por %p370_p4, %p369_p3 }
 0x691   :  { %p372_p6 = pnand %p371_p5, %p365_p2 }
 0x693   :  { %375 = shalt.err (!%p372_p6)
}
 0x694   :  { %s376_s27 = scalar_lea.hbm %s578_s9, 16 }
 0x695   :  { %p377_p7 = scmp.ne.s32.totalorder %s578_s9, %s376_s27  ;;  %p380_p8 = scmp.lt.u32.totalorder %s376_s27, %s578_s9 }
 0x697   :  { %p382_p9 = pnand %p380_p8, %p377_p7 }
 0x699   :  { %385 = shalt.err (!%p382_p9)
}
 0x69a   :  { %259 = dma.vmem_to_hbm [thread:$0]  %s257_s17, 16, %s578_s9, [#allocation5]  }
 0x6f0   :  { %v189_v33 = vpop.xlane.xlu0 %188 }
 0x6f1   :  { %190 = vst.msk [vmem:[%s575_s6] sm:$0xff] %vm178_vm8, %v189_v33 }
 0x6f2   :  { %386 = dma.done.wait [#allocation3], 16  }
 0x6f3   :  { %387 = vsyncadd [#allocation3], 4294967280 }
 0x6f4   :  { %388 = dma.done.wait [#allocation5], 32  }
 0x6f5   :  { %389 = vsyncadd [#allocation5], 4294967264 }
 0x6f6   :  { %277 = vsyncpa [#allocation3], 1 }
 0x6f7   :  { %278 = vsyncpa [#allocation5], 1 }

</bundles_post_ra>
